<compile_context>
chip_gen: v5e
topology: v5e:2x2
jax: 0.10.0
libtpu: 0.0.40
codegen_flags: <defaults>
</compile_context>

<pallas_src>
import functools

import jax
import jax.numpy as jnp
from jax import lax
from jax.experimental import pallas as pl
from jax.experimental.pallas import tpu as pltpu

LANES = 128
SUBLANES = 8


def _round_up(x, m):
    return ((x + m - 1) // m) * m


def _tpu_generation_params():
    """Return (num_cores, per-input block bytes, explicit vmem limit or None)."""
    kind = ""
    try:
        kind = jax.devices()[0].device_kind.lower()
    except Exception:
        pass
    if "v7" in kind or "7x" in kind:
        # 2 TensorCores, ~3.2 TB/s HBM per TC, 64 MiB VMEM per TC: big blocks
        # (2 inputs x 2 buffers x 8 MiB = 32 MiB) need an explicit limit.
        return 2, 8 * 1024 * 1024, 40 * 1024 * 1024
    if "v6" in kind:
        # Single TC, 32 MiB scoped-VMEM default: 4 MiB blocks -> 16 MiB, no flag.
        return 1, 4 * 1024 * 1024, None
    # v5e and unknown chips: 16 MiB scoped default -> 2 MiB blocks (8 MiB total).
    return 1, 2 * 1024 * 1024, None


def _mse_partial_sums_kernel(o_ref, l_ref, out_ref, acc_ref, *,
                             rows, blk, steps, needs_mask, acc_rows):
    """Accumulate sum((o - l)^2) over row-blocks into a per-core partial sum."""
    c = pl.program_id(0)   # core axis (size 1 on single-TC chips)
    i = pl.program_id(1)   # reduction axis over row blocks

    @pl.when(i == 0)
    def _():
        acc_ref[...] = jnp.zeros_like(acc_ref)

    d = o_ref[...].astype(jnp.float32) - l_ref[...].astype(jnp.float32)
    sq = d * d

    def accumulate(vals):
        if acc_rows == SUBLANES:
            # Tile-preserving reshape: pure unmasked VALU adds into an (8,128)
            # accumulator; no per-step cross-sublane (XLU) reduce.
            acc_ref[...] += vals.reshape(blk // SUBLANES, SUBLANES, LANES).sum(axis=0)
        else:
            acc_ref[...] += jnp.sum(vals, axis=0, keepdims=True)

    row0 = (c * steps + i) * blk
    if needs_mask:
        # Only the partial edge block / clamped duplicate block pays for the
        # iota + where mask; all other blocks take the unmasked fast path.
        is_partial = row0 + blk > rows

        @pl.when(is_partial)
        def _():
            rid = row0 + lax.broadcasted_iota(jnp.int32, sq.shape, 0)
            accumulate(jnp.where(rid < rows, sq, 0.0))

        @pl.when(jnp.logical_not(is_partial))
        def _():
            accumulate(sq)
    else:
        accumulate(sq)

    # Single cross-lane/sublane reduce + SMEM write, once per core.
    @pl.when(i == steps - 1)
    def _():
        out_ref[0, 0] = jnp.sum(acc_ref[...])


def _mse_sum_aligned(o2, l2, rows, num_cores, block_bytes, vmem_limit):
    """Sum of squared f32 diffs over a lane-dense (rows, 128) slab via Pallas."""
    itemsize = max(jnp.dtype(o2.dtype).itemsize, jnp.dtype(l2.dtype).itemsize)
    target_rows = max(SUBLANES,
                      (block_bytes // (LANES * itemsize)) // SUBLANES * SUBLANES)

    blk = rows if rows <= target_rows else target_rows
    acc_rows = SUBLANES if blk % SUBLANES == 0 else 1

    total_blocks = pl.cdiv(rows, blk)
    if total_blocks < num_cores:
        num_cores = 1
    steps = pl.cdiv(total_blocks, num_cores)
    needs_mask = (total_blocks * blk != rows) or (num_cores * steps != total_blocks)

    def in_index_map(c, i):
        # Clamp so a core's "extra" step never issues an out-of-bounds DMA; the
        # duplicate data it reads is fully masked out in the kernel.
        return (jnp.minimum(c * steps + i, total_blocks - 1), 0)

    kernel = functools.partial(
        _mse_partial_sums_kernel,
        rows=rows, blk=blk, steps=steps, needs_mask=needs_mask, acc_rows=acc_rows)

    if num_cores > 1:
        # 2-way TensorCore split on v7x; CORE_PARALLEL is what actually changes
        # codegen (plain "parallel" is a near-no-op).  Fallback keeps it valid.
        dim_sem = (getattr(pltpu, "CORE_PARALLEL", "parallel"), "arbitrary")
    else:
        dim_sem = ("arbitrary", "arbitrary")

    n_elems = rows * LANES
    bytes_accessed = n_elems * (jnp.dtype(o2.dtype).itemsize
                                + jnp.dtype(l2.dtype).itemsize) + num_cores * 4

    partials = pl.pallas_call(
        kernel,
        out_shape=jax.ShapeDtypeStruct((num_cores, 1), jnp.float32),
        grid_spec=pltpu.PrefetchScalarGridSpec(
            num_scalar_prefetch=0,
            grid=(num_cores, steps),
            in_specs=[
                pl.BlockSpec((blk, LANES), in_index_map),
                pl.BlockSpec((blk, LANES), in_index_map),
            ],
            out_specs=pl.BlockSpec((1, 1), lambda c, i: (c, 0),
                                   memory_space=pltpu.SMEM),
            scratch_shapes=[pltpu.VMEM((acc_rows, LANES), jnp.float32)],
        ),
        compiler_params=pltpu.CompilerParams(
            dimension_semantics=dim_sem,
            vmem_limit_bytes=vmem_limit,
        ),
        cost_estimate=pl.CostEstimate(
            flops=3 * n_elems, transcendentals=0, bytes_accessed=bytes_accessed),
    )(o2, l2)

    return jnp.sum(partials)


@jax.jit
def height_loss(output, label):
    """Equivalent of HeightLoss.forward: mean((f32(output) - f32(label))**2)."""
    assert output.shape == label.shape, "MSELoss requires matching shapes"
    n = output.size
    assert n > 0

    num_cores, block_bytes, vmem_limit = _tpu_generation_params()

    o = output.reshape(-1)
    l = label.reshape(-1)

    n_main = (n // LANES) * LANES
    total = jnp.float32(0.0)

    if n_main > 0:
        rows = n_main // LANES
        # Zero-copy reshape when n is lane-aligned; otherwise a cheap prefix
        # slice (the <128-element tail is handled below in plain jnp — no bulk
        # jnp.pad of the whole array).
        o_main = o if n_main == n else o[:n_main]
        l_main = l if n_main == n else l[:n_main]
        total = total + _mse_sum_aligned(
            o_main.reshape(rows, LANES), l_main.reshape(rows, LANES),
            rows, num_cores, block_bytes, vmem_limit)

    if n_main != n:
        # Ragged tail (< 128 elements): plain jnp at the same roofline.
        o_tail = o[n_main:].astype(jnp.float32)
        l_tail = l[n_main:].astype(jnp.float32)
        total = total + jnp.sum((o_tail - l_tail) ** 2)

    return total / jnp.float32(n)


def _reference(output, label):
    return jnp.mean((output.astype(jnp.float32) - label.astype(jnp.float32)) ** 2)


if __name__ == "__main__":
    key = jax.random.PRNGKey(0)
    k1, k2, k3, k4 = jax.random.split(key, 4)

    # Case 1: NCHW-style tensor, lane-aligned size (zero-copy fast path).
    shape = (2, 4, 16, 16)
    output = jax.random.normal(k1, shape, dtype=jnp.bfloat16)
    label = jax.random.normal(k2, shape, dtype=jnp.float32)

    loss = height_loss(output, label)
    jax.block_until_ready(loss)
    ref = _reference(output, label)
    assert jnp.allclose(loss, ref, rtol=1e-5, atol=1e-6), (loss, ref)

    # Case 2: ragged size (exercises the kernel-on-prefix + jnp-tail path).
    shape2 = (2, 4, 17, 9)
    output2 = jax.random.normal(k3, shape2, dtype=jnp.float32)
    label2 = jax.random.normal(k4, shape2, dtype=jnp.float32)

    loss2 = height_loss(output2, label2)
    jax.block_until_ready(loss2)
    ref2 = _reference(output2, label2)
    assert jnp.allclose(loss2, ref2, rtol=1e-5, atol=1e-6), (loss2, ref2)

    print("KERNEL_OK")
</pallas_src>

<mosaic_0001>
module attributes {stable_mosaic.version = 11 : i64} {
  func.func @_mse_partial_sums_kernel(%arg0: i32, %arg1: i32, %arg2: memref<16x128xbf16, #tpu.memory_space<vmem>>, %arg3: memref<16x128xf32, #tpu.memory_space<vmem>>, %arg4: memref<1x1xf32, #tpu.memory_space<smem>>, %arg5: memref<8x128xf32, #tpu.memory_space<vmem>>) attributes {dimension_semantics = [#tpu.dimension_semantics<arbitrary>, #tpu.dimension_semantics<arbitrary>], iteration_bounds = array<i64: 1, 1>, scalar_prefetch = 0 : i64, scratch_operands = 1 : i64, tpu.core_type = #tpu.core_type<tc>, window_params = [{transform_indices = @transform_0, window_bounds = array<i64: 16, 128>}, {transform_indices = @transform_1, window_bounds = array<i64: 16, 128>}, {transform_indices = @transform_2, window_bounds = array<i64: 1, 1>}]} {
    %c0_i32 = arith.constant 0 : i32
    %0 = arith.cmpi eq, %arg1, %c0_i32 : i32
    %1 = arith.extui %0 : i1 to i32
    %c0_i32_0 = arith.constant 0 : i32
    %2 = arith.cmpi ne, %1, %c0_i32_0 : i32
    scf.if %2 {
      %cst_10 = arith.constant 0.000000e+00 : f32
      %16 = vector.broadcast %cst_10 : f32 to vector<8x128xf32>
      %c0_11 = arith.constant 0 : index
      %c0_12 = arith.constant 0 : index
      %17 = vector.load %arg5[%c0_11, %c0_12] : memref<8x128xf32, #tpu.memory_space<vmem>>, vector<8x128xf32>
      tpu.vector_store %arg5[%c0_11, %c0_12], %16 {strides = array<i32>} : memref<8x128xf32, #tpu.memory_space<vmem>>, vector<8x128xf32>,
    } else {
    }
    %c0 = arith.constant 0 : index
    %c0_1 = arith.constant 0 : index
    %3 = vector.load %arg2[%c0, %c0_1] : memref<16x128xbf16, #tpu.memory_space<vmem>>, vector<16x128xbf16>
    %4 = arith.extf %3 : vector<16x128xbf16> to vector<16x128xf32>
    %c0_2 = arith.constant 0 : index
    %c0_3 = arith.constant 0 : index
    %5 = vector.load %arg3[%c0_2, %c0_3] : memref<16x128xf32, #tpu.memory_space<vmem>>, vector<16x128xf32>
    %6 = arith.subf %4, %5 : vector<16x128xf32>
    %7 = arith.mulf %6, %6 : vector<16x128xf32>
    %c0_4 = arith.constant 0 : index
    %c0_5 = arith.constant 0 : index
    %8 = vector.load %arg5[%c0_4, %c0_5] : memref<8x128xf32, #tpu.memory_space<vmem>>, vector<8x128xf32>
    %9 = vector.shape_cast %7 : vector<16x128xf32> to vector<2x8x128xf32>
    %cst = arith.constant dense<0.000000e+00> : vector<8x128xf32>
    %10 = vector.multi_reduction <add>, %9, %cst [0] : vector<2x8x128xf32> to vector<8x128xf32>
    %11 = arith.addf %8, %10 : vector<8x128xf32>
    %c0_6 = arith.constant 0 : index
    %c0_7 = arith.constant 0 : index
    %12 = vector.load %arg5[%c0_6, %c0_7] : memref<8x128xf32, #tpu.memory_space<vmem>>, vector<8x128xf32>
    tpu.vector_store %arg5[%c0_6, %c0_7], %11 {strides = array<i32>} : memref<8x128xf32, #tpu.memory_space<vmem>>, vector<8x128xf32>,
    %c0_i32_8 = arith.constant 0 : i32
    %13 = arith.cmpi eq, %arg1, %c0_i32_8 : i32
    %14 = arith.extui %13 : i1 to i32
    %c0_i32_9 = arith.constant 0 : i32
    %15 = arith.cmpi ne, %14, %c0_i32_9 : i32
    scf.if %15 {
      %c0_10 = arith.constant 0 : index
      %c0_11 = arith.constant 0 : index
      %16 = vector.load %arg5[%c0_10, %c0_11] : memref<8x128xf32, #tpu.memory_space<vmem>>, vector<8x128xf32>
      %17 = vector.shape_cast %16 : vector<8x128xf32> to vector<1x8x128xf32>
      %cst_12 = arith.constant dense<0.000000e+00> : vector<1xf32>
      %18 = vector.multi_reduction <add>, %17, %cst_12 [1, 2] : vector<1x8x128xf32> to vector<1xf32>
      %19 = vector.shape_cast %18 : vector<1xf32> to vector<1x1x1xf32>
      %20 = vector.extract %19[0, 0, 0] : f32 from vector<1x1x1xf32>
      %c0_13 = arith.constant 0 : index
      %c0_14 = arith.constant 0 : index
      %21 = memref.load %arg4[%c0_13, %c0_14] : memref<1x1xf32, #tpu.memory_space<smem>>
      memref.store %20, %arg4[%c0_13, %c0_14] : memref<1x1xf32, #tpu.memory_space<smem>>
    } else {
    }
    return
  }
  func.func @transform_0(%arg0: i32, %arg1: i32) -> (i32, i32) {
    %c1_i32 = arith.constant 1 : i32
    %0 = arith.muli %arg0, %c1_i32 : i32
    %1 = arith.addi %0, %arg1 : i32
    %c0_i32 = arith.constant 0 : i32
    %2 = arith.minsi %1, %c0_i32 : i32
    %c0_i32_0 = arith.constant 0 : i32
    %c0_i32_1 = arith.constant 0 : i32
    return %2, %c0_i32_0 : i32, i32
  }
  func.func @transform_1(%arg0: i32, %arg1: i32) -> (i32, i32) {
    %c1_i32 = arith.constant 1 : i32
    %0 = arith.muli %arg0, %c1_i32 : i32
    %1 = arith.addi %0, %arg1 : i32
    %c0_i32 = arith.constant 0 : i32
    %2 = arith.minsi %1, %c0_i32 : i32
    %c0_i32_0 = arith.constant 0 : i32
    %c0_i32_1 = arith.constant 0 : i32
    return %2, %c0_i32_0 : i32, i32
  }
  func.func @transform_2(%arg0: i32, %arg1: i32) -> (i32, i32) {
    %c0_i32 = arith.constant 0 : i32
    %c0_i32_0 = arith.constant 0 : i32
    return %arg0, %c0_i32 : i32, i32
  }
}

</mosaic_0001>

<bundles_post_ra>
// kernel: height_loss.1
= control target key start
LH: loop header
LB: loop body
LE: loop exit
PB: predicated region body
PF: predicated region fallthrough
CT: control target
= control target key end

     0   :  { %s186_s0 = inlined_call_operand.vmem [shape: bf16[16,128], index: 0, kind: input, shape index: {}]   ;;  %s187_s1 = inlined_call_operand.vmem [shape: f32[16,128], index: 1, kind: input, shape index: {}]   ;;  %s188_s2 = inlined_call_operand.hbm [shape: f32[1,1], index: 2, kind: output, shape index: {}]  }
   0x1   :  { %v138_v0 = vld [vmem:[%s186_s0] sm:$0xff]   ;;  %v86_v2 = vld [vmem:[%s187_s1 + $0x8] sm:$0xff] }
   0x2   :  { %v85_v1 = vld [vmem:[%s187_s1] sm:$0xff]  ;;  %v139_v3 = vunpack.c.l.bf16 %v138_v0  ;;  %v140_v4 = vunpack.c.h.bf16 %v138_v0 }
   0x3   :  { %7 = vsyncpa [#allocation4], 0  ;;  %s115_s1 = sshll.u32 %s188_s2, 4  ;;  %s158_s17 = smov [#allocation3]   ;;  %s116_s1 = int_to_ptr.hbm [resolvable:$true] %s115_s1 }
   0x4   :  { %v87_v5 = vsub.f32 %v139_v3, %v85_v1  ;;  %v88_v6 = vsub.f32 %v140_v4, %v86_v2 }
   0x6   :  { %v89_v7 = vmul.f32 %v87_v5, %v87_v5  ;;  %v90_v8 = vmul.f32 %v88_v6, %v88_v6 }
   0x8   :  { %v92_v9 = vadd.f32 %v90_v8, %v89_v7 }
   0xa   :  { %99 = vadd.xlane.f32.xlu0 %v92_v9 }
  0x7d   :  { %v100_v10 = vpop.xlane.xlu0 %99 }
  0x7e   :  { %v101_v11 = vrot.slane %v100_v10, 4 }
  0x80   :  { %v102_v12 = vadd.f32 %v101_v11, %v100_v10 }
  0x82   :  { %v103_v13 = vrot.slane %v102_v12, 2 }
  0x84   :  { %v104_v14 = vadd.f32 %v103_v13, %v102_v12 }
  0x86   :  { %v105_v15 = vrot.slane %v104_v14, 1 }
  0x88   :  { %v106_v16 = vadd.f32 %v105_v15, %v104_v14 }
  0x8a   :  { %141 = vpush %v106_v16 }
  0xbb   :  { %s142_s16 = spop %141 }
  0xbc   :  { %109 = sst [smem:[#allocation3]] %s142_s16 }
  0xbd   :  { %118 = dma.smem_to_hbm %s158_s17, 16, %s116_s1, [#allocation4]  }
  0xbe   :  { %156 = dma.done.wait [#allocation4], 16  }
  0xbf   :  { %157 = vsyncadd [#allocation4], 4294967280 }
  0xc0   :  { %123 = sfence }
  0xc1   :  { %124 = vsyncpa [#allocation4], 1 }

</bundles_post_ra>
